<compile_context>
chip_gen: v6e
topology: v6e:2x2x1
jax: 0.10.0
libtpu: 0.0.40
codegen_flags: <defaults>
</compile_context>

<pallas_src>
import jax
import jax.numpy as jnp
from jax.experimental import pallas as pl
from jax.experimental.pallas import tpu as pltpu


def _round_up(n, m):
    return ((n + m - 1) // m) * m


# Max batch-tile width (lanes).  Working set per step is ~200*tb bytes
# (double-buffered x/out blocks + a few live (16, tb) f32 activation temps),
# so 64K lanes is ~13-18 MiB -- safe on every generation incl. v7x (64 MiB VMEM).
_TB_MAX = 65536
_VMEM_LIMIT_BYTES = 48 * 1024 * 1024


def mlp_kernel(x_ref, sp_ref, w_ref, o_ref):
    # x_ref : (1, TB)       batch on lanes
    # sp_ref: (16, 8)       col0 = w1, col1..3 = b1..b3, col4[0:2] = b4
    # w_ref : (3, 16, 16)   [fc2 W, fc3 W, fc4 W zero-padded to 16 rows], (out, in)
    # o_ref : (2, TB)
    x = x_ref[...]                                    # (1, TB)

    w1 = sp_ref[:, 0:1]                               # (16, 1)
    b1 = sp_ref[:, 1:2]                               # (16, 1)
    b2 = sp_ref[:, 2:3]                               # (16, 1)
    b3 = sp_ref[:, 3:4]                               # (16, 1)
    b4 = sp_ref[0:2, 4:5]                             # (2, 1)

    # fc1 (1 -> 16): K=1 rank-1 op -> VPU outer product, skip the MXU.
    h = jnp.maximum(w1 * x + b1, 0.0)                 # (16, TB)

    # fc2 / fc3 (16 -> 16): lane-dense MXU matmuls, y = W @ h.
    h = jnp.maximum(
        jnp.dot(w_ref[0], h, preferred_element_type=jnp.float32) + b2, 0.0)
    h = jnp.maximum(
        jnp.dot(w_ref[1], h, preferred_element_type=jnp.float32) + b3, 0.0)

    # fc4 (16 -> 2) on the otherwise-idle MXU (w4 zero-padded to 16 output rows),
    # then a direct lane-dense store of rows 0:2 (no concatenate / interleave).
    o = jnp.dot(w_ref[2], h, preferred_element_type=jnp.float32)   # (16, TB)
    o_ref[...] = (o[0:2, :] + b4).astype(o_ref.dtype)


def pack_params(params):
    """One-time packing of the tiny parameters (hoisted out of the hot path)."""
    sp = jnp.zeros((16, 8), jnp.float32)
    sp = sp.at[:, 0].set(params["w1"][:, 0])
    sp = sp.at[:, 1].set(params["b1"])
    sp = sp.at[:, 2].set(params["b2"])
    sp = sp.at[:, 3].set(params["b3"])
    sp = sp.at[0:2, 4].set(params["b4"])
    w4_pad = jnp.zeros((16, 16), jnp.float32).at[0:2, :].set(params["w4"])
    w = jnp.stack([params["w2"], params["w3"], w4_pad], axis=0)     # (3, 16, 16)
    return sp, w


def _auto_tile(B, tb):
    """Pick a lane-dense batch tile; large tiles, but >=2 (even) grid steps when possible."""
    B128 = _round_up(max(B, 1), 128)
    if tb is not None:
        tb = max(128, _round_up(tb, 128))
    elif B128 < 2 * 128:
        tb = 128
    else:
        n = max(2, pl.cdiv(B128, _TB_MAX))
        n += n % 2                         # even step count -> both v7x TCs get tiles
        tb = min(_TB_MAX, _round_up(pl.cdiv(B128, n), 128))
    Bp = _round_up(B128, tb)
    return tb, Bp


def net_forward(x, packed, tb=None, transpose_output=True):
    """x: (B, 1) float32 (PyTorch convention).  packed = pack_params(params).

    Returns (B, 2) float32 (or lane-dense (2, B) if transpose_output=False, which
    skips an HBM round-trip-sized wrapper transpose)."""
    sp, w = packed
    B = x.shape[0]
    tb, Bp = _auto_tile(B, tb)

    # Batch onto the lane axis, zero-padded to a multiple of the tile.
    xT = jnp.pad(x.astype(jnp.float32).T, ((0, 0), (0, Bp - B)))    # (1, Bp)

    grid = (Bp // tb,)
    out_t = pl.pallas_call(
        mlp_kernel,
        out_shape=jax.ShapeDtypeStruct((2, Bp), jnp.float32),
        grid=grid,
        in_specs=[
            pl.BlockSpec((1, tb), lambda i: (0, i)),                # x batch tile
            pl.BlockSpec((16, 8), lambda i: (0, 0)),                # packed small params
            pl.BlockSpec((3, 16, 16), lambda i: (0, 0, 0)),         # w2/w3/w4 stack
        ],
        out_specs=pl.BlockSpec((2, tb), lambda i: (0, i)),
        compiler_params=pltpu.CompilerParams(
            dimension_semantics=("parallel",),
            vmem_limit_bytes=_VMEM_LIMIT_BYTES,
        ),
    )(xT, sp, w)

    out_t = out_t[:, :B]                                            # (2, B)
    return out_t.T if transpose_output else out_t


def init_params(key):
    """PyTorch nn.Linear layout: W is (out, in), b is (out,)."""
    def linear(k, fan_in, fan_out):
        kw, kb = jax.random.split(k)
        bound = 1.0 / jnp.sqrt(jnp.float32(fan_in))
        w = jax.random.uniform(kw, (fan_out, fan_in), jnp.float32, -bound, bound)
        b = jax.random.uniform(kb, (fan_out,), jnp.float32, -bound, bound)
        return w, b

    k1, k2, k3, k4 = jax.random.split(key, 4)
    w1, b1 = linear(k1, 1, 16)
    w2, b2 = linear(k2, 16, 16)
    w3, b3 = linear(k3, 16, 16)
    w4, b4 = linear(k4, 16, 2)
    return dict(w1=w1, b1=b1, w2=w2, b2=b2, w3=w3, b3=b3, w4=w4, b4=b4)


def net_forward_ref(x, p):
    """Pure-JAX reference (y = x @ W^T + b, PyTorch semantics)."""
    h = jnp.maximum(x @ p["w1"].T + p["b1"], 0.0)
    h = jnp.maximum(h @ p["w2"].T + p["b2"], 0.0)
    h = jnp.maximum(h @ p["w3"].T + p["b3"], 0.0)
    return h @ p["w4"].T + p["b4"]


if __name__ == "__main__":
    key = jax.random.PRNGKey(0)
    kp, kx = jax.random.split(key)

    params = init_params(kp)
    packed = pack_params(params)         # hoisted one-time packing

    B = 300                              # non-multiple of 128: exercises padding
    x = jax.random.normal(kx, (B, 1), jnp.float32)

    # Auto tile: B=300 -> 2 grid steps of 256 lanes (even count for v7x sharding).
    out = net_forward(x, packed)
    out = jax.block_until_ready(out)

    ref = net_forward_ref(x, params)
    assert out.shape == (B, 2), out.shape
    assert jnp.allclose(out, ref, atol=1e-5, rtol=1e-4), (out, ref)

    # Explicit-tile path (also covers a single-step grid).
    out2 = jax.block_until_ready(net_forward(x, packed, tb=512))
    assert jnp.allclose(out2, ref, atol=1e-5, rtol=1e-4)

    print("KERNEL_OK")
</pallas_src>

<mosaic_0001>
module attributes {stable_mosaic.version = 11 : i64} {
  func.func @mlp_kernel(%arg0: i32, %arg1: memref<1x256xf32, #tpu.memory_space<vmem>>, %arg2: memref<16x8xf32, #tpu.memory_space<vmem>>, %arg3: memref<3x16x16xf32, #tpu.memory_space<vmem>>, %arg4: memref<2x256xf32, #tpu.memory_space<vmem>>) attributes {dimension_semantics = [#tpu.dimension_semantics<parallel>], iteration_bounds = array<i64: 2>, scalar_prefetch = 0 : i64, scratch_operands = 0 : i64, tpu.core_type = #tpu.core_type<tc>, window_params = [{transform_indices = @transform_0, window_bounds = array<i64: 1, 256>}, {pipeline_mode = #tpu.pipeline_mode<synchronous>, transform_indices = @transform_1, window_bounds = array<i64: 16, 8>}, {pipeline_mode = #tpu.pipeline_mode<synchronous>, transform_indices = @transform_2, window_bounds = array<i64: 3, 16, 16>}, {transform_indices = @transform_3, window_bounds = array<i64: 2, 256>}]} {
    %c0 = arith.constant 0 : index
    %c0_0 = arith.constant 0 : index
    %0 = vector.load %arg1[%c0, %c0_0] : memref<1x256xf32, #tpu.memory_space<vmem>>, vector<1x256xf32>
    %c0_1 = arith.constant 0 : index
    %c0_2 = arith.constant 0 : index
    %1 = vector.load %arg2[%c0_1, %c0_2] : memref<16x8xf32, #tpu.memory_space<vmem>>, vector<16x1xf32>
    %c0_3 = arith.constant 0 : index
    %c1 = arith.constant 1 : index
    %2 = vector.load %arg2[%c0_3, %c1] : memref<16x8xf32, #tpu.memory_space<vmem>>, vector<16x1xf32>
    %c0_4 = arith.constant 0 : index
    %c2 = arith.constant 2 : index
    %3 = vector.load %arg2[%c0_4, %c2] : memref<16x8xf32, #tpu.memory_space<vmem>>, vector<16x1xf32>
    %c0_5 = arith.constant 0 : index
    %c3 = arith.constant 3 : index
    %4 = vector.load %arg2[%c0_5, %c3] : memref<16x8xf32, #tpu.memory_space<vmem>>, vector<16x1xf32>
    %c0_6 = arith.constant 0 : index
    %c4 = arith.constant 4 : index
    %5 = vector.load %arg2[%c0_6, %c4] : memref<16x8xf32, #tpu.memory_space<vmem>>, vector<2x1xf32>
    %6 = vector.broadcast %1 : vector<16x1xf32> to vector<16x256xf32>
    %7 = vector.broadcast %0 : vector<1x256xf32> to vector<16x256xf32>
    %8 = arith.mulf %6, %7 : vector<16x256xf32>
    %9 = vector.broadcast %2 : vector<16x1xf32> to vector<16x256xf32>
    %10 = arith.addf %8, %9 : vector<16x256xf32>
    %cst = arith.constant 0.000000e+00 : f32
    %11 = vector.broadcast %cst : f32 to vector<16x256xf32>
    %12 = arith.maximumf %10, %11 : vector<16x256xf32>
    %c0_7 = arith.constant 0 : index
    %c0_8 = arith.constant 0 : index
    %c0_9 = arith.constant 0 : index
    %13 = vector.load %arg3[%c0_7, %c0_8, %c0_9] : memref<3x16x16xf32, #tpu.memory_space<vmem>>, vector<1x16x16xf32>
    %14 = vector.shape_cast %13 : vector<1x16x16xf32> to vector<16x16xf32>
    %cst_10 = arith.constant dense<0.000000e+00> : vector<16x256xf32>
    %15 = tpu.matmul %14, %12, %cst_10 {dimension_numbers = #tpu.dot_dimension_numbers<[1], [0], [0], [1], [0, 0, 1, 1], [], []>} : vector<16x16xf32>, vector<16x256xf32>, vector<16x256xf32> -> vector<16x256xf32>
    %16 = vector.broadcast %3 : vector<16x1xf32> to vector<16x256xf32>
    %17 = arith.addf %15, %16 : vector<16x256xf32>
    %cst_11 = arith.constant 0.000000e+00 : f32
    %18 = vector.broadcast %cst_11 : f32 to vector<16x256xf32>
    %19 = arith.maximumf %17, %18 : vector<16x256xf32>
    %c1_12 = arith.constant 1 : index
    %c0_13 = arith.constant 0 : index
    %c0_14 = arith.constant 0 : index
    %20 = vector.load %arg3[%c1_12, %c0_13, %c0_14] : memref<3x16x16xf32, #tpu.memory_space<vmem>>, vector<1x16x16xf32>
    %21 = vector.shape_cast %20 : vector<1x16x16xf32> to vector<16x16xf32>
    %cst_15 = arith.constant dense<0.000000e+00> : vector<16x256xf32>
    %22 = tpu.matmul %21, %19, %cst_15 {dimension_numbers = #tpu.dot_dimension_numbers<[1], [0], [0], [1], [0, 0, 1, 1], [], []>} : vector<16x16xf32>, vector<16x256xf32>, vector<16x256xf32> -> vector<16x256xf32>
    %23 = vector.broadcast %4 : vector<16x1xf32> to vector<16x256xf32>
    %24 = arith.addf %22, %23 : vector<16x256xf32>
    %cst_16 = arith.constant 0.000000e+00 : f32
    %25 = vector.broadcast %cst_16 : f32 to vector<16x256xf32>
    %26 = arith.maximumf %24, %25 : vector<16x256xf32>
    %c2_17 = arith.constant 2 : index
    %c0_18 = arith.constant 0 : index
    %c0_19 = arith.constant 0 : index
    %27 = vector.load %arg3[%c2_17, %c0_18, %c0_19] : memref<3x16x16xf32, #tpu.memory_space<vmem>>, vector<1x16x16xf32>
    %28 = vector.shape_cast %27 : vector<1x16x16xf32> to vector<16x16xf32>
    %cst_20 = arith.constant dense<0.000000e+00> : vector<16x256xf32>
    %29 = tpu.matmul %28, %26, %cst_20 {dimension_numbers = #tpu.dot_dimension_numbers<[1], [0], [0], [1], [0, 0, 1, 1], [], []>} : vector<16x16xf32>, vector<16x256xf32>, vector<16x256xf32> -> vector<16x256xf32>
    %30 = vector.extract_strided_slice %29 {offsets = [0, 0], sizes = [2, 256], strides = [1, 1]} : vector<16x256xf32> to vector<2x256xf32>
    %31 = vector.broadcast %5 : vector<2x1xf32> to vector<2x256xf32>
    %32 = arith.addf %30, %31 : vector<2x256xf32>
    %c0_21 = arith.constant 0 : index
    %c0_22 = arith.constant 0 : index
    %33 = vector.load %arg4[%c0_21, %c0_22] : memref<2x256xf32, #tpu.memory_space<vmem>>, vector<2x256xf32>
    tpu.vector_store %arg4[%c0_21, %c0_22], %32 {strides = array<i32>} : memref<2x256xf32, #tpu.memory_space<vmem>>, vector<2x256xf32>,
    return
  }
  func.func @transform_0(%arg0: i32) -> (i32, i32) {
    %c0_i32 = arith.constant 0 : i32
    %c0_i32_0 = arith.constant 0 : i32
    return %c0_i32, %arg0 : i32, i32
  }
  func.func @transform_1(%arg0: i32) -> (i32, i32) {
    %c0_i32 = arith.constant 0 : i32
    %c0_i32_0 = arith.constant 0 : i32
    %c0_i32_1 = arith.constant 0 : i32
    return %c0_i32, %c0_i32_0 : i32, i32
  }
  func.func @transform_2(%arg0: i32) -> (i32, i32, i32) {
    %c0_i32 = arith.constant 0 : i32
    %c0_i32_0 = arith.constant 0 : i32
    %c0_i32_1 = arith.constant 0 : i32
    %c0_i32_2 = arith.constant 0 : i32
    return %c0_i32, %c0_i32_0, %c0_i32_1 : i32, i32, i32
  }
  func.func @transform_3(%arg0: i32) -> (i32, i32) {
    %c0_i32 = arith.constant 0 : i32
    %c0_i32_0 = arith.constant 0 : i32
    return %c0_i32, %arg0 : i32, i32
  }
}

</mosaic_0001>

<bundles_post_ra>
// kernel: tpu_custom_call.1
= control target key start
LH: loop header
LB: loop body
LE: loop exit
PB: predicated region body
PF: predicated region fallthrough
CT: control target
= control target key end

     0   :  { %8 = vsyncpa [#allocation3], 0  ;;  %s955_s0 = inlined_call_operand.vmem [shape: f32[1,512], index: 0, kind: input, shape index: {}]   ;;  %s956_s1 = inlined_call_operand.vmem [shape: f32[16,8], index: 1, kind: input, shape index: {}]   ;;  %s957_s2 = inlined_call_operand.hbm [shape: f32[3,16,16], index: 2, kind: input, shape index: {}]   ;;  %s958_s3 = inlined_call_operand.hbm [shape: f32[2,512], index: 3, kind: output, shape index: {}]  }
   0x1   :  { %9 = vsyncpa [#allocation4], 0 }
   0x2   :  { %11 = vsyncpa [#allocation4 + $0x1], 0  ;;  %s824_s12 = smov 0   ;;  %s826_s13 = smov 0  }
   0x3   :  { %s828_s14 = smov 0   ;;  %s830_s15 = smov 0  }
   0x4 LB: > { %s845_s16 = sadd.s32 4294967295, %s792_s15   ;;  %s611_s17 = sadd.s32 4294967294, %s792_s15   ;;  %s792_s15 = sphi %s830_s15, %s966_s15   ;;  %s788_s14 = sphi %s828_s14, %s965_s14   ;;  %s784_s13 = sphi %s826_s13, %s964_s13   ;;  %s780_s12 = sphi %s824_s12, %s963_s12  }
   0x5   : > { %s849_s18 = sadd.s32 1, %s792_s15   ;;  %s92_s19 = sadd.s32 1, %s788_s14 }
   0x6   : > { %s89_s20 = ssub.s32 %s792_s15, %s849_s18  ;;  %p102_p0 = scmp.ne.s32.totalorder %s788_s14, %s784_s13 }
   0x7   : > { %p90_p1 = scmp.eq.s32.totalorder %s89_s20, 0  ;;  %p103_p2 = scmp.eq.s32.totalorder %s845_s16, 1 }
   0x8   : > { %p108_p3 = scmp.ne.s32.totalorder %s784_s13, %s780_s12  ;;  %p109_p4 = scmp.eq.s32.totalorder %s611_s17, 1 }
   0x9   : > { %s860_s21 = scalar_select %p90_p1, %s788_s14, %s92_s19  }
   0xa   : > { %p862_p5 = por %p103_p2, %p102_p0  ;;  %p866_p6 = por %p109_p4, %p108_p3 }
   0xb   : > { %p612_p7 = scmp.ge.s32.totalorder %s792_s15, 1  ;;  %p116_p8 = scmp.lt.s32.totalorder %s792_s15, 3 }
   0xc   : > { %s960_s23 = scalar_select %p866_p6, 1, 0 }
   0xd   : > { %p650_p9 = scmp.eq.s32.totalorder %s845_s16, 0  ;;  %p873_p10 = pnand %p612_p7, %p116_p8 }
   0xe   : > { %s794_s25 = smov [#allocation2]  }
   0xf   : > { %s131_s26 = sshll.u32 %s794_s25, 4  ;;  %p642_p11 = pneg %p873_p10  ;;  %s132_s26 = int_to_ptr.vmem [resolvable:$true] %s131_s26 }
  0x10   : > { %s713_s27 = scalar_lea.vmem %s132_s26, 768  ;;  %p721_p3 = scmp.lt.s32.totalorder %s132_s26, %s132_s26 }
  0x11   : > { %p643_p12 = pnand %p650_p9, %p642_p11  ;;  %p714_p0 = scmp.ne.s32.totalorder %s132_s26, %s713_s27 }
  0x12   : > { %p722_p4 = scmp.lt.s32.totalorder %s713_s27, %s713_s27 }
  0x13   : > { %p704_p13 = pneg %p643_p12 }
  0x14   : > { %p723_p6 = por %p722_p4, %p721_p3 }
  0x15   : > { %p716_p1 = pnand %p714_p0, %p704_p13 }
  0x17   : > { %p717_p2 = pneg %p716_p1 }
  0x19   : > { %p724_p7 = pnand %p723_p6, %p717_p2 }
  0x1b   : > { %727 = shalt.err (!%p724_p7)
}
  0x1c   : > { %s795_s28 = smov 128   ;;  %s796_s29 = smov 8  }
  0x1d   : > { %645 = dma.hbm_to_vmem [thread:$0]  (!%p643_p12), %s957_s2, 768, %s132_s26, [#allocation3], %s795_s28, %s795_s28, %s796_s29  }
  0x1e   : > { %155 = sbr.rel (%p873_p10) target bundleno = 796 (0x31c), region = 32 }
  0x23   : > { %771 = dma.done.wait (%p650_p9), [#allocation3], 768  }
  0x24   : > { %773 = vsyncadd (%p650_p9), [#allocation3], 4294966528  ;;  %v797_v0 = vmov 1   ;;  %v798_v1 = vmov 0   ;;  %v186_v2 = vld [vmem:[%s956_s1 + $0x8] sm:$0xff]  ;;  %v185_v3 = vld [vmem:[%s956_s1] sm:$0xff]  ;;  %v199_v6 = vlaneseq }
  0x25   : > { %695 = vset.pattern.permute.xlu1 %v797_v0  ;;  %694 = vset.pattern.permute.xlu0 %v798_v1  ;;  %v799_v4 = vmov 0.0   ;;  %v800_v5 = vmov 2   ;;  %s618_s9 = sshll.u32 %s845_s16, 1  ;;  %v229_v29 = vld [vmem:[#allocation2] sm:$0xff]  ;;  %vm239_vm0 = vcmask 130048   ;;  %v230_v30 = vld [vmem:[#allocation2 + $0x8] sm:$0xff] }
  0x26   : > { %218 = vperm.xlu1 %695, %v186_v2   ;;  %195 = vperm.xlu0 %694, %v186_v2   ;;  %p179_p6 = scmp.lt.s32.totalorder %s618_s9, 3  ;;  %v200_v7 = vshrl.u32 %v199_v6, 7  ;;  %v801_v31 = vmov 3   ;;  %v328_v46 = vld [vmem:[#allocation2 + $0x10] sm:$0xff]  ;;  %v329_v47 = vld [vmem:[#allocation2 + $0x18] sm:$0xff]  ;;  %v802_v49 = vmov 4  }
  0x27   : > { %310 = vmatprep.mubr.f32.mxu0 %v799_v4  ;;  %316 = vmatprep.mubr.f32.mxu1 %v799_v4  ;;  %v187_v48 = vld [vmem:[%s956_s1] sm:$0x3]  ;;  %v427_v1 = vld [vmem:[#allocation2 + $0x28] sm:$0xff]  ;;  %s175_s24 = sand.u32 1, %s784_s13   ;;  %s631_s26 = sshll.u32 %s845_s16, 6 }
  0x28   : > { %s968_s9 = smov (!%p179_p6, %s618_s9), 3  ;;  %v201_v8 = vsub.s32 0, %v200_v7  ;;  %v205_v9 = vsub.s32 1, %v200_v7  ;;  %v426_v0 = vld [vmem:[#allocation2 + $0x20] sm:$0xff]  ;;  %s617_s25 = sshll.u32 %s175_s24, 2 }
  0x29   : > { %s181_s17 = scalar_lea.vmem %s955_s0, %s968_s9  ;;  %s177_s27 = scalar_lea.vmem [#allocation5], %s617_s25 }
  0x2a   : > { %214 = vperm.xlu1 %695, %v185_v3   ;;  %190 = vperm.xlu0 %694, %v185_v3   ;;  %v184_v10 = vld [vmem:[%s181_s17] sm:$0x3]  ;;  %s543_s28 = sshll.u32 %s177_s27, 4  ;;  %s920_s4 = scalar_lea.hbm %s958_s3, %s631_s26  ;;  %s544_s28 = int_to_ptr.vmem [resolvable:$true] %s543_s28 }
  0x2b   : > { %v202_v11 = vrot.slane %v184_v10, %v201_v8  ;;  %v206_v12 = vrot.slane %v184_v10, %v205_v9  ;;  %s529_s5 = scalar_lea.sflag [#allocation4], %s175_s24  ;;  %s728_s6 = scalar_lea.vmem %s544_s28, 64 }
  0x2c   : > { %p729_p8 = scmp.ne.s32.totalorder %s544_s28, %s728_s6  ;;  %s803_s16 = smov [#allocation5]  }
  0x2d   : > { %s732_s7 = sshll.u32 %s803_s16, 4  ;;  %s733_s7 = int_to_ptr.vmem [resolvable:$false] %s732_s7 }
  0x2e   : > { %696 = vset.pattern.permute.xlu0 %v800_v5  ;;  %697 = vset.pattern.permute.xlu1 %v800_v5  ;;  %p730_p9 = pnand %p729_p8, %p862_p5  ;;  %s734_s8 = scalar_lea.vmem %s733_s7, 128 }
  0x2f   : > { %236 = vperm.xlu0 %696, %v186_v2   ;;  %232 = vperm.xlu1 %697, %v185_v3   ;;  %p735_p11 = scmp.lt.s32.totalorder %s544_s28, %s733_s7  ;;  %p736_p12 = scmp.lt.s32.totalorder %s734_s8, %s728_s6 }
  0x30   : > { %p731_p10 = pneg %p730_p9 }
  0x31   : > { %p737_p13 = por %p736_p12, %p735_p11 }
  0x33   : > { %699 = vset.pattern.permute.xlu0 %v801_v31  ;;  %698 = vset.pattern.permute.xlu1 %v801_v31  ;;  %p738_p0 = pnand %p737_p13, %p731_p10 }
  0x34   : > { %331 = vperm.xlu0 %699, %v185_v3   ;;  %335 = vperm.xlu1 %698, %v186_v2  }
  0x38   : > { %700 = vset.pattern.permute.xlu1 %v802_v49  ;;  %701 = vset.pattern.permute.xlu0 %v802_v49 }
  0x39   : > { %511 = vperm.xlu1 %700, %v187_v48  }
  0xa1   : > { %v219_v13 = vpop.permute.xlu1 %218  ;;  %v196_v14 = vpop.permute.xlu0 %195 }
  0xa2   : > { %v211_v15 = vmul.f32 %v202_v11, %v196_v14  ;;  %v212_v16 = vmul.f32 %v206_v12, %v196_v14 }
  0xa4   : > { %v224_v17 = vadd.f32 %v219_v13, %v212_v16  ;;  %v223_v18 = vadd.f32 %v219_v13, %v211_v15 }
  0xa5   : > { %v191_v19 = vpop.permute.xlu0 %190  ;;  %v215_v24 = vpop.permute.xlu1 %214 }
  0xa6   : > { %v209_v20 = vmul.f32 %v202_v11, %v191_v19  ;;  %v210_v21 = vmul.f32 %v206_v12, %v191_v19  ;;  %v228_v22 = vmax.f32 %v224_v17, 0.0  ;;  %v227_v23 = vmax.f32 %v223_v18, 0.0 }
  0xa8   : > { %v221_v25 = vadd.f32 %v215_v24, %v209_v20  ;;  %v222_v26 = vadd.f32 %v215_v24, %v210_v21  ;;  %274 = vmatprep.subr.mxu0 %v228_v22  ;;  %632 = vmatprep.subr.mxu1 %v228_v22 }
  0xa9   : > { %275 = vmatpush1.msra.mxu0 %v227_v23  ;;  %634 = vmatpush1.msra.mxu1 %v227_v23 }
  0xaa   : > { %v226_v27 = vmax.f32 %v222_v26, 0.0  ;;  %v225_v28 = vmax.f32 %v221_v25, 0.0  ;;  %v237_v32 = vpop.permute.xlu0 %236  ;;  %v233_v33 = vpop.permute.xlu1 %232 }
  0xac   : > { %276 = vmatprep.subr.mxu0 %v226_v27  ;;  %633 = vmatprep.subr.mxu1 %v226_v27 }
  0xad   : > { %277 = vmatpush1.msra.mxu0 %v225_v28  ;;  %635 = vmatpush1.msra.mxu1 %v225_v28 }
  0xae   : > { %619 = vmatmul.mubr.msk.f32.vlgmr.msra.gmra.mxu0 %vm239_vm0, %v229_v29  ;;  %620 = vmatmul.mubr.msk.f32.vlgmr.msra.gmra.mxu1 %vm239_vm0, %v230_v30 }
  0xaf   : > { %408 = vmatprep.mubr.f32.mxu1 %v799_v4  ;;  %498 = vmatprep.mubr.f32.mxu0 %v799_v4  ;;  %v336_v52 = vpop.permute.xlu1 %335  ;;  %v332_v54 = vpop.permute.xlu0 %331 }
  0xb4   : > { %v512_v3 = vpop.permute.xlu1 %511 }
 0x16e   : > { %v312_v34 = vpop.f32.mrf.mxu0  ;;  %v318_v35 = vpop.f32.mrf.mxu1 }
 0x16f   : > { %v319_v36 = vadd.f32 %v318_v35, %v237_v32  ;;  %v313_v41 = vadd.f32 %v312_v34, %v233_v33 }
 0x170   : > { %v314_v37 = vpop.f32.mrf.mxu0  ;;  %v320_v38 = vpop.f32.mrf.mxu1 }
 0x171   : > { %v315_v39 = vadd.f32 %v314_v37, %v233_v33  ;;  %v321_v40 = vadd.f32 %v320_v38, %v237_v32  ;;  %v325_v43 = vmax.f32 %v319_v36, 0.0  ;;  %v323_v45 = vmax.f32 %v313_v41, 0.0 }
 0x173   : > { %v326_v42 = vmax.f32 %v321_v40, 0.0  ;;  %v324_v44 = vmax.f32 %v315_v39, 0.0 }
 0x175   : > { %372 = vmatprep.subr.mxu1 %v326_v42 }
 0x176   : > { %373 = vmatpush1.msra.mxu1 %v325_v43 }
 0x177   : > { %374 = vmatprep.subr.mxu1 %v324_v44 }
 0x178   : > { %375 = vmatpush1.msra.mxu1 %v323_v45 }
 0x179   : > { %621 = vmatmul.mubr.msk.f32.vlgmr.msra.gmra.mxu1 %vm239_vm0, %v328_v46 }
 0x17a   : > { %414 = vmatprep.mubr.f32.mxu1 %v799_v4 }
 0x17d   : > { %622 = vmatmul.mubr.msk.f32.gmra.mxu1 %vm239_vm0, %v329_v47 }
 0x239   : > { %v410_v50 = vpop.f32.mrf.mxu1 }
 0x23a   : > { %v411_v59 = vadd.f32 %v410_v50, %v332_v54 }
 0x23b   : > { %v412_v51 = vpop.f32.mrf.mxu1 }
 0x23c   : > { %v413_v57 = vadd.f32 %v412_v51, %v332_v54  ;;  %v421_v63 = vmax.f32 %v411_v59, 0.0 }
 0x23d   : > { %v416_v53 = vpop.f32.mrf.mxu1 }
 0x23e   : > { %v417_v55 = vadd.f32 %v416_v53, %v336_v52  ;;  %v422_v62 = vmax.f32 %v413_v57, 0.0 }
 0x23f   : > { %v418_v56 = vpop.f32.mrf.mxu1 }
 0x240   : > { %v419_v58 = vadd.f32 %v418_v56, %v336_v52  ;;  %v423_v61 = vmax.f32 %v417_v55, 0.0 }
 0x242   : > { %v424_v60 = vmax.f32 %v419_v58, 0.0 }
 0x244   : > { %462 = vmatprep.subr.mxu0 %v424_v60 }
 0x245   : > { %463 = vmatpush1.msra.mxu0 %v423_v61 }
 0x246   : > { %464 = vmatprep.subr.mxu0 %v422_v62 }
 0x247   : > { %465 = vmatpush1.msra.mxu0 %v421_v63 }
 0x248   : > { %623 = vmatmul.mubr.msk.f32.vlgmr.msra.gmra.mxu0 %vm239_vm0, %v426_v0 }
 0x249   : > { %504 = vmatprep.mubr.f32.mxu0 %v799_v4 }
 0x24c   : > { %624 = vmatmul.mubr.msk.f32.gmra.mxu0 %vm239_vm0, %v427_v1 }
 0x308   : > { %v500_v2 = vpop.f32.mrf.mxu0 }
 0x309   : > { %v514_v6 = vadd.f32 %v512_v3, %v500_v2 }
 0x30a   : > { %v502_v5 = vpop.f32.mrf.mxu0 }
 0x30b   : > { %v515_v7 = vadd.f32 %v512_v3, %v502_v5 }
 0x30c   : > { %v506_v8 = vpop.f32.mrf.mxu0 }
 0x30d   : > { %v518_v9 = vcombine.low %v514_v6, %v515_v7 }
 0x30e   : > { %v507_v4 = vpop.f32.mrf.mxu0 }
 0x30f   : > { %625 = vst.sshfl [vmem:[%s177_s27] sm:$0x33 pattern:$0x76325410] %v518_v9 }
 0x310   : > { %741 = shalt.err (!%p738_p0)
}
 0x311   : > { %s742_s9 = scalar_lea.hbm %s920_s4, 64  ;;  %s746_s17 = scalar_lea.hbm %s958_s3, 128 }
 0x312   : > { %p743_p1 = scmp.ne.s32.totalorder %s920_s4, %s742_s9  ;;  %p747_p4 = scmp.lt.s32.totalorder %s920_s4, %s958_s3 }
 0x313   : > { %p748_p7 = scmp.lt.s32.totalorder %s746_s17, %s742_s9 }
 0x314   : > { %p744_p2 = pnand %p743_p1, %p862_p5 }
 0x315   : > { %p749_p6 = por %p748_p7, %p747_p4 }
 0x316   : > { %p745_p3 = pneg %p744_p2 }
 0x318   : > { %p750_p8 = pnand %p749_p6, %p745_p3 }
 0x31a   : > { %753 = shalt.err (!%p750_p8)
}
 0x31b   : > { %640 = dma.vmem_to_hbm [thread:$0]  (%p862_p5), %s544_s28, 64, %s920_s4, %s529_s5  }
 0x31c PF: > { %p652_p9 = scmp.ge.s32.totalorder %s792_s15, 2  ;;  %s555_s24 = sand.u32 1, %s780_s12  }
 0x31d   : > { %p962_p10 = scmp.ne.s32.totalorder %s960_s23, 0  ;;  %s556_s25 = scalar_lea.sflag [#allocation4], %s555_s24 }
 0x31f   : > { %p647_p11 = pnand %p652_p9, %p962_p10 }
 0x321   : > { %p648_p12 = pneg %p647_p11 }
 0x323   : > { %775 = dma.done.wait (%p648_p12), %s556_s25, 64  }
 0x324   : > { %777 = vsyncadd (%p648_p12), %s556_s25, 4294967232  ;;  %p14_p13 = scmp.ge.s32.totalorder %s849_s18, 4   ;;  %s963_s12 = smov %s784_s13 }
 0x325   : > { %s964_s13 = smov %s788_s14  ;;  %s965_s14 = smov %s860_s21 }
 0x326   : > { %s966_s15 = smov %s849_s18  ;;  %16 = sbr.rel (!%p14_p13) target bundleno = 4 (0x4), region = 74 }
 0x32b   :  { %561 = vsyncpa [#allocation3], 1 }
 0x32c   :  { %563 = vsyncpa [#allocation3 + $0x1], 1 }
 0x32d   :  { %564 = vsyncpa [#allocation4], 1 }
 0x32e   :  { %566 = vsyncpa [#allocation4 + $0x1], 1 }

</bundles_post_ra>
